<compile_context>
chip_gen: v7x
topology: tpu7x:2x2x1
jax: 0.10.0
libtpu: 0.0.40
codegen_flags: <defaults>
</compile_context>

<pallas_src>
import functools

import jax
import jax.numpy as jnp
import numpy as np
from jax.experimental import pallas as pl
from jax.experimental.pallas import tpu as pltpu


_VMEM_LIMIT_BYTES = 32 * 1024 * 1024   # safe on v5e/v6e (128 MiB) and v7x (64 MiB)
_TILE_BUDGET_BYTES = 8 * 1024 * 1024   # double-buffered logits tiles per call


def _round_up(x, m):
    return (x + m - 1) // m * m


def _pick_block_b(b, c, n_logits, itemsize):
    """Batch-tile rows: multiple of 8 (16 for sub-32-bit), sized to VMEM budget."""
    sub = 16 if itemsize < 4 else 8
    per_row = max(1, 2 * n_logits * c * itemsize)      # x2 for double buffering
    tb = max(sub, (_TILE_BUDGET_BYTES // per_row) // sub * sub)
    return int(min(tb, _round_up(b, sub)))


def _tile_loss_rows(logits_f32, onehot, valid, lb_smooth):
    """Per-row -(log_softmax(logits) * y).sum(-1) for one (TB, C) tile.

    y = lb_smooth / C + (1 - lb_smooth) * one_hot(tgt). Since sum(y) == 1 (for
    in-range targets, as PyTorch CrossEntropyLoss requires) the loss simplifies
    to (max + logsumexp_shifted) - sum(logits * y); with smoothing the dot is
    decomposed so the smoothed-y matrix is never materialized. Rows with
    valid == False contribute 0.
    """
    c = logits_f32.shape[-1]
    m = jnp.max(logits_f32, axis=-1, keepdims=True)                       # (TB,1)
    lse = jnp.log(jnp.sum(jnp.exp(logits_f32 - m), axis=-1, keepdims=True))
    dot_hot = jnp.sum(logits_f32 * onehot, axis=-1, keepdims=True)        # logits[tgt]
    if lb_smooth > 0.0:
        row_sum = jnp.sum(logits_f32, axis=-1, keepdims=True)
        dot = (lb_smooth / c) * row_sum + (1.0 - lb_smooth) * dot_hot
    else:
        dot = dot_hot
    per_row = (m + lse) - dot
    return jnp.where(valid, per_row, 0.0)


def _xent_kernel(tgt_ref, logits_ref, out_ref, *, lb_smooth, batch, block_b):
    """Single-logits tile: writes sum over valid rows of this tile."""
    i = pl.program_id(0)
    row = jax.lax.broadcasted_iota(jnp.int32, (block_b, 1), 0) + i * block_b
    valid = row < batch
    c = logits_ref.shape[-1]
    col = jax.lax.broadcasted_iota(jnp.int32, (block_b, c), 1)            # (TB,C)
    onehot = (col == tgt_ref[...]).astype(jnp.float32)
    per_row = _tile_loss_rows(logits_ref[...].astype(jnp.float32),
                              onehot, valid, lb_smooth)
    total = jnp.sum(per_row, keepdims=True)                               # (1,1)
    out_ref[...] = jnp.broadcast_to(total, out_ref.shape).astype(jnp.float32)


def _xent_fused_kernel(tgt_ref, aug_ref, ori_ref, out_ref, *,
                       lb_smooth, batch, block_b):
    """Fused search-mode tile: smoothed CE on aug + plain CE on ori, one pass.

    The target DMA, row-validity mask and one-hot are built once and shared
    between the two branches.
    """
    i = pl.program_id(0)
    row = jax.lax.broadcasted_iota(jnp.int32, (block_b, 1), 0) + i * block_b
    valid = row < batch
    c = aug_ref.shape[-1]
    col = jax.lax.broadcasted_iota(jnp.int32, (block_b, c), 1)            # (TB,C)
    onehot = (col == tgt_ref[...]).astype(jnp.float32)
    p_aug = _tile_loss_rows(aug_ref[...].astype(jnp.float32), onehot, valid,
                            lb_smooth)
    p_ori = _tile_loss_rows(ori_ref[...].astype(jnp.float32), onehot, valid,
                            0.0)
    total = jnp.sum(p_aug + p_ori, keepdims=True)                         # (1,1)
    out_ref[...] = jnp.broadcast_to(total, out_ref.shape).astype(jnp.float32)


def _launch(kernel, logits_list, target, lb_smooth, block_b=None):
    b, c = logits_list[0].shape
    n = len(logits_list)
    itemsize = jnp.dtype(logits_list[0].dtype).itemsize
    if block_b is None:
        block_b = _pick_block_b(b, c, n, itemsize)
    num_tiles = int(pl.cdiv(b, block_b))
    tgt2d = target.reshape(b, 1).astype(jnp.int32)

    kern = functools.partial(kernel, lb_smooth=float(lb_smooth),
                             batch=b, block_b=block_b)
    in_specs = [pl.BlockSpec((block_b, 1), lambda i: (i, 0))]
    in_specs += [pl.BlockSpec((block_b, c), lambda i: (i, 0)) for _ in logits_list]

    out = pl.pallas_call(
        kern,
        out_shape=jax.ShapeDtypeStruct((8, 128 * num_tiles), jnp.float32),
        grid_spec=pltpu.PrefetchScalarGridSpec(
            num_scalar_prefetch=0,
            grid=(num_tiles,),
            in_specs=in_specs,
            # each tile owns its own lane-dense (8,128) block -> axis is parallel
            out_specs=pl.BlockSpec((8, 128), lambda i: (0, i)),
        ),
        compiler_params=pltpu.CompilerParams(
            dimension_semantics=("parallel",),
            vmem_limit_bytes=_VMEM_LIMIT_BYTES,
        ),
        cost_estimate=pl.CostEstimate(
            flops=int(5 * n * b * c),
            transcendentals=int(n * b * c),
            bytes_accessed=int(n * b * c * itemsize + b * 4
                               + num_tiles * 8 * 128 * 4),
        ),
    )(tgt2d, *logits_list)

    partials = out[0, 0::128]                       # lane 0 of each tile's block
    return jnp.sum(partials) * jnp.float32(1.0 / b)


def _softmax_xent(logits, target, lb_smooth=0.0, block_b=None):
    """Mean softmax cross-entropy with optional label smoothing (Pallas)."""
    return _launch(_xent_kernel, [logits], target, lb_smooth, block_b)


def _softmax_xent_fused(logits_aug, logits_ori, target, lb_smooth=0.0,
                        block_b=None):
    """Smoothed CE(logits_aug) + plain CE(logits_ori), fused single launch."""
    return _launch(_xent_fused_kernel, [logits_aug, logits_ori], target,
                   lb_smooth, block_b)


class DRASearchLoss:
    """JAX/Pallas port of the PyTorch DRASearchLoss module (no parameters)."""

    def __call__(self, pred, target, search=False, lb_smooth=0.0):
        if search:
            has_aug = pred[0] is not None
            has_ori = pred[1] is not None
            if has_aug and has_ori and pred[0].shape == pred[1].shape:
                # Fused: one launch, one DMA + one-hot of the shared target.
                return _softmax_xent_fused(pred[0], pred[1], target, lb_smooth)
            aug = (_softmax_xent(pred[0], target, lb_smooth=lb_smooth)
                   if has_aug else jnp.float32(0.0))
            ori = (_softmax_xent(pred[1], target, lb_smooth=0.0)
                   if has_ori else jnp.float32(0.0))
            return aug + ori
        return _softmax_xent(pred[0], target, lb_smooth=0.0)


def _reference(pred, target, search=False, lb_smooth=0.0):
    """Pure-JAX reference mirroring the PyTorch forward."""
    def ce(logits, tgt, smooth):
        logits = logits.astype(jnp.float32)
        logp = jax.nn.log_softmax(logits, axis=-1)
        c = logits.shape[-1]
        y = jax.nn.one_hot(tgt, c, dtype=jnp.float32)
        y = smooth / c + (1.0 - smooth) * y
        return jnp.mean(-jnp.sum(logp * y, axis=-1))

    if search:
        aug = ce(pred[0], target, lb_smooth) if pred[0] is not None else 0.0
        ori = ce(pred[1], target, 0.0) if pred[1] is not None else 0.0
        return aug + ori
    return ce(pred[0], target, 0.0)


if __name__ == "__main__":
    key = jax.random.PRNGKey(0)
    k0, k1, k2, k3 = jax.random.split(key, 4)

    B, C = 16, 32
    pred_aug = jax.random.normal(k0, (B, C), dtype=jnp.float32)
    pred_ori = jax.random.normal(k1, (B, C), dtype=jnp.float32)
    target = jax.random.randint(k2, (B,), 0, C, dtype=jnp.int32)

    loss_fn = DRASearchLoss()

    # 1) non-search mode: plain CE on pred[0]
    loss_plain = loss_fn((pred_aug, None), target, search=False)
    # 2) search mode, both branches -> fused kernel (smoothed aug + plain ori)
    loss_search = loss_fn((pred_aug, pred_ori), target, search=True, lb_smooth=0.1)
    # 3) search mode, aug-only branch (pred[1] is None)
    loss_aug_only = loss_fn((pred_aug, None), target, search=True, lb_smooth=0.1)
    jax.block_until_ready((loss_plain, loss_search, loss_aug_only))

    np.testing.assert_allclose(
        np.asarray(loss_plain),
        np.asarray(_reference((pred_aug, None), target, search=False)),
        rtol=1e-5, atol=1e-5)
    np.testing.assert_allclose(
        np.asarray(loss_search),
        np.asarray(_reference((pred_aug, pred_ori), target, True, 0.1)),
        rtol=1e-5, atol=1e-5)
    np.testing.assert_allclose(
        np.asarray(loss_aug_only),
        np.asarray(_reference((pred_aug, None), target, True, 0.1)),
        rtol=1e-5, atol=1e-5)

    # 4) multi-tile grid + ragged last tile (B not a multiple of block_b)
    B2 = 12
    pred_aug2 = jax.random.normal(k3, (B2, C), dtype=jnp.float32)
    pred_ori2 = jax.random.normal(k1, (B2, C), dtype=jnp.float32)
    target2 = jax.random.randint(k2, (B2,), 0, C, dtype=jnp.int32)
    loss_ragged = _softmax_xent_fused(pred_aug2, pred_ori2, target2,
                                      lb_smooth=0.1, block_b=8)
    jax.block_until_ready(loss_ragged)
    np.testing.assert_allclose(
        np.asarray(loss_ragged),
        np.asarray(_reference((pred_aug2, pred_ori2), target2, True, 0.1)),
        rtol=1e-5, atol=1e-5)

    # 5) bf16 logits streamed directly (f32 compute in-kernel)
    loss_bf16 = loss_fn((pred_aug.astype(jnp.bfloat16),
                         pred_ori.astype(jnp.bfloat16)),
                        target, search=True, lb_smooth=0.1)
    jax.block_until_ready(loss_bf16)
    np.testing.assert_allclose(
        np.asarray(loss_bf16),
        np.asarray(_reference((pred_aug.astype(jnp.bfloat16),
                               pred_ori.astype(jnp.bfloat16)),
                              target, True, 0.1)),
        rtol=1e-5, atol=1e-5)

    print("KERNEL_OK")
</pallas_src>

<mosaic_0001>
module attributes {stable_mosaic.version = 11 : i64} {
  func.func @_xent_kernel(%arg0: i32, %arg1: memref<16x1xi32, #tpu.memory_space<vmem>>, %arg2: memref<16x32xf32, #tpu.memory_space<vmem>>, %arg3: memref<8x128xf32, #tpu.memory_space<vmem>>) attributes {dimension_semantics = [#tpu.dimension_semantics<parallel>], iteration_bounds = array<i64: 1>, scalar_prefetch = 0 : i64, scratch_operands = 0 : i64, tpu.core_type = #tpu.core_type<tc>, window_params = [{transform_indices = @transform_0, window_bounds = array<i64: 16, 1>}, {transform_indices = @transform_1, window_bounds = array<i64: 16, 32>}, {transform_indices = @transform_2, window_bounds = array<i64: 8, 128>}]} {
    %0 = tpu.iota {dimensions = array<i32: 0>} : vector<16x1xi32>
    %c16_i32 = arith.constant 16 : i32
    %1 = arith.muli %arg0, %c16_i32 : i32
    %2 = vector.broadcast %1 : i32 to vector<16x1xi32>
    %3 = arith.addi %0, %2 : vector<16x1xi32>
    %c16_i32_0 = arith.constant 16 : i32
    %4 = vector.broadcast %c16_i32_0 : i32 to vector<16x1xi32>
    %5 = arith.cmpi slt, %3, %4 : vector<16x1xi32>
    %6 = tpu.iota {dimensions = array<i32: 1>} : vector<16x32xi32>
    %c0 = arith.constant 0 : index
    %c0_1 = arith.constant 0 : index
    %7 = vector.load %arg1[%c0, %c0_1] : memref<16x1xi32, #tpu.memory_space<vmem>>, vector<16x1xi32>
    %8 = vector.broadcast %7 : vector<16x1xi32> to vector<16x32xi32>
    %9 = arith.cmpi eq, %6, %8 : vector<16x32xi32>
    %10 = arith.extui %9 : vector<16x32xi1> to vector<16x32xi32>
    %11 = arith.sitofp %10 : vector<16x32xi32> to vector<16x32xf32>
    %c0_2 = arith.constant 0 : index
    %c0_3 = arith.constant 0 : index
    %12 = vector.load %arg2[%c0_2, %c0_3] : memref<16x32xf32, #tpu.memory_space<vmem>>, vector<16x32xf32>
    %cst = arith.constant dense<0xFF800000> : vector<16xf32>
    %13 = vector.multi_reduction <maximumf>, %12, %cst [1] : vector<16x32xf32> to vector<16xf32>
    %14 = vector.shape_cast %13 : vector<16xf32> to vector<16x1xf32>
    %15 = vector.broadcast %14 : vector<16x1xf32> to vector<16x32xf32>
    %16 = arith.subf %12, %15 : vector<16x32xf32>
    %17 = math.exp %16 : vector<16x32xf32>
    %cst_4 = arith.constant dense<0.000000e+00> : vector<16xf32>
    %18 = vector.multi_reduction <add>, %17, %cst_4 [1] : vector<16x32xf32> to vector<16xf32>
    %19 = vector.shape_cast %18 : vector<16xf32> to vector<16x1xf32>
    %20 = math.log %19 : vector<16x1xf32>
    %21 = arith.mulf %12, %11 : vector<16x32xf32>
    %cst_5 = arith.constant dense<0.000000e+00> : vector<16xf32>
    %22 = vector.multi_reduction <add>, %21, %cst_5 [1] : vector<16x32xf32> to vector<16xf32>
    %23 = vector.shape_cast %22 : vector<16xf32> to vector<16x1xf32>
    %24 = arith.addf %14, %20 : vector<16x1xf32>
    %25 = arith.subf %24, %23 : vector<16x1xf32>
    %cst_6 = arith.constant 0.000000e+00 : f32
    %26 = vector.broadcast %cst_6 : f32 to vector<16x1xf32>
    %27 = arith.select %5, %25, %26 : vector<16x1xi1>, vector<16x1xf32>
    %28 = vector.shape_cast %27 : vector<16x1xf32> to vector<1x16x1xf32>
    %cst_7 = arith.constant dense<0.000000e+00> : vector<1xf32>
    %29 = vector.multi_reduction <add>, %28, %cst_7 [1, 2] : vector<1x16x1xf32> to vector<1xf32>
    %30 = vector.shape_cast %29 : vector<1xf32> to vector<1x1x1xf32>
    %31 = vector.extract %30[0, 0, 0] : f32 from vector<1x1x1xf32>
    %32 = vector.broadcast %31 : f32 to vector<1x1xf32>
    %33 = vector.shape_cast %32 : vector<1x1xf32> to vector<1x1xf32>
    %34 = vector.broadcast %33 : vector<1x1xf32> to vector<8x128xf32>
    %c0_8 = arith.constant 0 : index
    %c0_9 = arith.constant 0 : index
    %35 = vector.load %arg3[%c0_8, %c0_9] : memref<8x128xf32, #tpu.memory_space<vmem>>, vector<8x128xf32>
    tpu.vector_store %arg3[%c0_8, %c0_9], %34 {strides = array<i32>} : memref<8x128xf32, #tpu.memory_space<vmem>>, vector<8x128xf32>,
    return
  }
  func.func @transform_0(%arg0: i32) -> (i32, i32) {
    %c0_i32 = arith.constant 0 : i32
    %c0_i32_0 = arith.constant 0 : i32
    return %arg0, %c0_i32 : i32, i32
  }
  func.func @transform_1(%arg0: i32) -> (i32, i32) {
    %c0_i32 = arith.constant 0 : i32
    %c0_i32_0 = arith.constant 0 : i32
    return %arg0, %c0_i32 : i32, i32
  }
  func.func @transform_2(%arg0: i32) -> (i32, i32) {
    %c0_i32 = arith.constant 0 : i32
    %c0_i32_0 = arith.constant 0 : i32
    return %c0_i32, %arg0 : i32, i32
  }
}

</mosaic_0001>

<bundles_post_ra>
// kernel: tpu_custom_call.1
= control target key start
LH: loop header
LB: loop body
LE: loop exit
PB: predicated region body
PF: predicated region fallthrough
CT: control target
= control target key end

     0   :  { %vm39_vm0 = vcmask 261120   ;;  %v146_v4 = vmov 0   ;;  %s194_s0 = inlined_call_operand.vmem [shape: s32[16,1], index: 0, kind: input, shape index: {}]   ;;  %s195_s1 = inlined_call_operand.vmem [shape: f32[16,32], index: 1, kind: input, shape index: {}]   ;;  %s196_s2 = inlined_call_operand.hbm [shape: f32[8,128], index: 2, kind: output, shape index: {}]  }
   0x1   :  { %v37_v0 = vld [vmem:[%s195_s1] sm:$0xff]  ;;  %v38_v1 = vld [vmem:[%s195_s1 + $0x8] sm:$0xff]  ;;  %112 = vset.pattern.permute.xlu1 %v146_v4  ;;  %113 = vset.pattern.permute.xlu0 %v146_v4 }
   0x2   :  { %v23_v2 = vld [vmem:[%s194_s0] sm:$0xff]  ;;  %v40_v3 = vsel %vm39_vm0, %v37_v0, -inf }
   0x3   :  { %7 = vsyncpa [#allocation3], 0  ;;  %41 = vmax.xlane.f32.xlu0 %v40_v3  ;;  %26 = vperm.xlu1 %112, %v23_v2   ;;  %v43_v5 = vsel %vm39_vm0, %v38_v1, -inf  ;;  %v24_v6 = vld [vmem:[%s194_s0 + $0x8] sm:$0xff]  ;;  %v21_v8 = vlaneseq  ;;  %v147_v17 = vmov 0.0   ;;  %vm76_vm3 = vcmask 7168  }
   0x4   :  { %s148_s0 = smov [#allocation2]  }
   0x5   :  { %v22_v13 = vand.u32 127, %v21_v8  ;;  %s97_s1 = sshll.u32 %s148_s0, 4  ;;  %s98_s1 = int_to_ptr.vmem [resolvable:$true] %s97_s1 }
   0x6   :  { %s122_s18 = scalar_lea.vmem %s98_s1, 128  ;;  %p127_p1 = scmp.lt.s32.totalorder %s98_s1, %s98_s1 }
   0x7   :  { %44 = vmax.xlane.f32.xlu0 %v43_v5  ;;  %29 = vperm.xlu1 %112, %v24_v6   ;;  %p123_p0 = scmp.ne.s32.totalorder %s98_s1, %s122_s18  ;;  %p128_p2 = scmp.lt.s32.totalorder %s122_s18, %s122_s18 }
   0x9   :  { %p129_p3 = por %p128_p2, %p127_p1 }
   0xb   :  { %p130_p4 = pnand %p129_p3, %p123_p0 }
  0x82   :  { %v27_v11 = vpop.permute.xlu1 %26 }
  0x83   :  { %vm31_vm1 = vcmp.eq.s32.totalorder %v22_v13, %v27_v11 }
  0x84   :  { %v105_v18 = vsel %vm31_vm1, 1.0, %v147_v17 }
  0x85   :  { %v62_v19 = vmul.f32 %v105_v18, %v37_v0 }
  0x86   :  { %v30_v16 = vpop.permute.xlu1 %29 }
  0x87   :  { %vm32_vm2 = vcmp.eq.s32.totalorder %v22_v13, %v30_v16  ;;  %v64_v23 = vsel %vm39_vm0, %v62_v19, 0.0 }
  0x88   :  { %v106_v21 = vsel %vm32_vm2, 1.0, %v147_v17 }
  0x89   :  { %v63_v24 = vmul.f32 %v106_v21, %v38_v1 }
  0x8b   :  { %v67_v27 = vsel %vm39_vm0, %v63_v24, 0.0 }
  0x90   :  { %v42_v7 = vpop.xlane.xlu0 %41 }
  0x91   :  { %v46_v9 = vsub.f32 %v37_v0, %v42_v7 }
  0x93   :  { %v48_v10 = vmul.f32 1.442695, %v46_v9 }
  0x94   :  { %v45_v12 = vpop.xlane.xlu0 %44 }
  0x95   :  { %114 = vpow2.f32 %v48_v10  ;;  %v47_v14 = vsub.f32 %v38_v1, %v45_v12 }
  0x97   :  { %v50_v15 = vmul.f32 1.442695, %v47_v14 }
  0x99   :  { %116 = vpow2.f32 %v50_v15 }
  0x9f   :  { %v115_v20 = vpop.eup %114 }
  0xa0   :  { %v52_v22 = vsel %vm39_vm0, %v115_v20, 0.0 }
  0xa1   :  { %53 = vadd.xlane.f32.xlu0 %v52_v22 }
  0xa3   :  { %v117_v25 = vpop.eup %116 }
  0xa4   :  { %v55_v26 = vsel %vm39_vm0, %v117_v25, 0.0 }
  0xa5   :  { %56 = vadd.xlane.f32.xlu1 %v55_v26  ;;  %65 = vadd.xlane.f32.xlu0 %v64_v23 }
  0xa9   :  { %68 = vadd.xlane.f32.xlu0 %v67_v27 }
 0x12e   :  { %v54_v28 = vpop.xlane.xlu0 %53 }
 0x12f   :  { %118 = vlog2.f32 %v54_v28 }
 0x132   :  { %v57_v29 = vpop.xlane.xlu1 %56  ;;  %v66_v32 = vpop.xlane.xlu0 %65 }
 0x133   :  { %120 = vlog2.f32 %v57_v29 }
 0x136   :  { %v69_v38 = vpop.xlane.xlu0 %68 }
 0x139   :  { %v119_v30 = vpop.eup %118 }
 0x13a   :  { %v59_v31 = vmul.f32 0.6931472, %v119_v30 }
 0x13c   :  { %v70_v33 = vadd.f32 %v59_v31, %v42_v7 }
 0x13d   :  { %v121_v34 = vpop.eup %120 }
 0x13e   :  { %v61_v35 = vmul.f32 0.6931472, %v121_v34  ;;  %v72_v36 = vsub.f32 %v70_v33, %v66_v32 }
 0x140   :  { %v71_v37 = vadd.f32 %v61_v35, %v45_v12  ;;  %v77_v40 = vsel %vm76_vm3, %v72_v36, 0.0 }
 0x142   :  { %v73_v39 = vsub.f32 %v71_v37, %v69_v38 }
 0x144   :  { %v78_v41 = vsel %vm76_vm3, %v73_v39, 0.0 }
 0x145   :  { %v79_v42 = vadd.f32 %v78_v41, %v77_v40 }
 0x147   :  { %80 = vadd.xlane.f32.xlu0 %v79_v42 }
 0x1d4   :  { %v81_v43 = vpop.xlane.xlu0 %80 }
 0x1d5   :  { %v82_v44 = vrot.slane %v81_v43, 4 }
 0x1d7   :  { %v83_v45 = vadd.f32 %v82_v44, %v81_v43 }
 0x1d9   :  { %v84_v46 = vrot.slane %v83_v45, 2 }
 0x1db   :  { %v85_v47 = vadd.f32 %v84_v46, %v83_v45 }
 0x1dd   :  { %v86_v48 = vrot.slane %v85_v47, 1 }
 0x1df   :  { %v87_v49 = vadd.f32 %v86_v48, %v85_v47 }
 0x1e1   :  { %107 = vpush %v87_v49 }
 0x212   :  { %s108_s17 = spop %107 }
 0x213   :  { %v89_v50 = vstv %s108_s17 }
 0x214   :  { %90 = vst [vmem:[#allocation2] sm:$0xff] %v89_v50 }
 0x215   :  { %133 = shalt.err (!%p130_p4)
}
 0x216   :  { %s134_s21 = scalar_lea.hbm %s196_s2, 128 }
 0x217   :  { %p135_p5 = scmp.ne.s32.totalorder %s196_s2, %s134_s21  ;;  %p138_p6 = scmp.lt.u32.totalorder %s134_s21, %s196_s2 }
 0x219   :  { %p140_p7 = pnand %p138_p6, %p135_p5 }
 0x21b   :  { %143 = shalt.err (!%p140_p7)
}
 0x21c   :  { %100 = dma.vmem_to_hbm [thread:$0]  %s98_s1, 128, %s196_s2, [#allocation3]  }
 0x21d   :  { %144 = dma.done.wait [#allocation3], 128  }
 0x21e   :  { %145 = vsyncadd [#allocation3], 4294967168 }
 0x21f   :  { %104 = vsyncpa [#allocation3], 1 }

</bundles_post_ra>
